<compile_context>
chip_gen: v7x
topology: tpu7x:2x2x1
jax: 0.10.0
libtpu: 0.0.40
codegen_flags: <defaults>
</compile_context>

<pallas_src>
import math

import jax
import jax.numpy as jnp
from jax import lax
from jax.experimental import pallas as pl
from jax.experimental.pallas import tpu as pltpu


NEG_INF = -1e30  # large finite negative: NaN-safe even for fully-masked rows


# ----------------------------- tiling helpers -----------------------------

def _tile_sublane(dim, target):
    """Block size for a second-to-last dim: a divisor of `dim` that is a multiple of 8,
    or the full dim."""
    if dim <= target:
        return dim
    if dim % 8 == 0:
        t = (target // 8) * 8
        while t >= 8:
            if dim % t == 0:
                return t
            t -= 8
    return dim


def _tile_lane(dim, target):
    """Block size for a last (lane) dim: a divisor of `dim` that is a multiple of 128,
    or the full dim."""
    if dim <= target:
        return dim
    if dim % 128 == 0:
        t = (target // 128) * 128
        while t >= 128:
            if dim % t == 0:
                return t
            t -= 128
    return dim


# ----------------------------- linear (projection) kernel -----------------------------

def _linear_kernel(x_ref, w_ref, b_ref, o_ref, acc_ref):
    # x: (tm, tk), w: (tk, tn), b: (1, tn) -> o: (tm, tn); grid = (M/tm, N/tn, K/tk)
    @pl.when(pl.program_id(2) == 0)
    def _():
        acc_ref[...] = jnp.zeros_like(acc_ref)

    acc_ref[...] += jnp.dot(x_ref[...], w_ref[...],
                            preferred_element_type=jnp.float32)

    @pl.when(pl.program_id(2) == pl.num_programs(2) - 1)
    def _():
        o_ref[...] = (acc_ref[...] + b_ref[...].astype(jnp.float32)).astype(o_ref.dtype)


def pallas_linear(x2d, w, b, *, out_dtype=None, tm=256, tn=256, tk=512):
    """x2d: (M, K); w: (K, N); b: (N,). Computes x @ w + b (torch Linear with the
    weight already stored transposed as (in, out))."""
    M, K = x2d.shape
    K2, N = w.shape
    assert K == K2
    out_dtype = out_dtype or x2d.dtype

    tm = _tile_sublane(M, tm)          # second-to-last of x block and out block
    tn = _tile_lane(N, tn)             # last dim of w block and out block
    tk = _tile_lane(K, tk)             # last dim of x block / second-to-last of w block

    grid = (M // tm, N // tn, K // tk)
    return pl.pallas_call(
        _linear_kernel,
        out_shape=jax.ShapeDtypeStruct((M, N), out_dtype),
        grid_spec=pltpu.PrefetchScalarGridSpec(
            num_scalar_prefetch=0,
            grid=grid,
            in_specs=[
                pl.BlockSpec((tm, tk), lambda i, j, k: (i, k)),
                pl.BlockSpec((tk, tn), lambda i, j, k: (k, j)),
                pl.BlockSpec((1, tn), lambda i, j, k: (0, j)),
            ],
            out_specs=pl.BlockSpec((tm, tn), lambda i, j, k: (i, j)),
            scratch_shapes=[pltpu.VMEM((tm, tn), jnp.float32)],
        ),
        compiler_params=pltpu.CompilerParams(
            dimension_semantics=("parallel", "parallel", "arbitrary")),
    )(x2d, w, b.reshape(1, N))


# ----------------------------- flash causal attention kernel -----------------------------

def _flash_attn_kernel(q_ref, k_ref, v_ref, o_ref, m_ref, l_ref, acc_ref):
    # blocks: q/o (1, H, tq, hd), k/v (1, H, tkv, hd); grid = (B, T//tq, T//tkv), kv last.
    _, H, tq, hd = q_ref.shape
    tkv = k_ref.shape[2]
    scale = 1.0 / math.sqrt(hd)

    qi = pl.program_id(1)
    ki = pl.program_id(2)

    @pl.when(ki == 0)
    def _():
        m_ref[...] = jnp.full_like(m_ref, NEG_INF)
        l_ref[...] = jnp.zeros_like(l_ref)
        acc_ref[...] = jnp.zeros_like(acc_ref)

    # Causal block skipping: a kv block contributes only if its first column index
    # is <= the last query row index of this q block (lower-triangle/diagonal blocks).
    @pl.when(ki * tkv <= qi * tq + (tq - 1))
    def _():
        q = q_ref[0]          # (H, tq, hd)
        k = k_ref[0]          # (H, tkv, hd)
        v = v_ref[0]          # (H, tkv, hd)

        # q @ k^T per head without an explicit transpose (contract last dims).
        s = jnp.einsum("hqd,hkd->hqk", q, k,
                       preferred_element_type=jnp.float32) * scale   # (H, tq, tkv)

        # Causal mask from global row/col indices (only diagonal blocks are actually
        # affected; the select is cheap VPU work next to the matmuls).
        row = qi * tq + lax.broadcasted_iota(jnp.int32, (tq, tkv), 0)
        col = ki * tkv + lax.broadcasted_iota(jnp.int32, (tq, tkv), 1)
        s = jnp.where((col <= row)[None], s, NEG_INF)

        m_prev = m_ref[...]                                    # (H, tq, 1)
        m_new = jnp.maximum(m_prev, jnp.max(s, axis=-1, keepdims=True))
        alpha = jnp.exp(m_prev - m_new)                        # (H, tq, 1)
        p = jnp.exp(s - m_new)                                 # (H, tq, tkv)

        l_ref[...] = alpha * l_ref[...] + jnp.sum(p, axis=-1, keepdims=True)
        acc_ref[...] = alpha * acc_ref[...] + jnp.einsum(
            "hqk,hkd->hqd", p.astype(v.dtype), v,
            preferred_element_type=jnp.float32)
        m_ref[...] = m_new

    @pl.when(ki == pl.num_programs(2) - 1)
    def _():
        # Deferred softmax normalization: one (H, tq, 1) reciprocal + (H, tq, hd)
        # multiply instead of a (H, tq, T) divide.
        inv_l = pl.reciprocal(l_ref[...], approx=False)
        o_ref[0] = (acc_ref[...] * inv_l).astype(o_ref.dtype)


def pallas_flash_causal_attention(q, k, v, *, tq=256, tkv=256):
    """q, k, v: (B, H, T, hd) -> (B, H, T, hd), causal flash attention."""
    B, H, T, hd = q.shape
    tq = _tile_sublane(T, tq)
    tkv = _tile_sublane(T, tkv)
    grid = (B, T // tq, T // tkv)

    qo_spec = pl.BlockSpec((1, H, tq, hd), lambda b, qi, ki: (b, 0, qi, 0))
    kv_spec = pl.BlockSpec((1, H, tkv, hd), lambda b, qi, ki: (b, 0, ki, 0))

    return pl.pallas_call(
        _flash_attn_kernel,
        out_shape=jax.ShapeDtypeStruct((B, H, T, hd), q.dtype),
        grid_spec=pltpu.PrefetchScalarGridSpec(
            num_scalar_prefetch=0,
            grid=grid,
            in_specs=[qo_spec, kv_spec, kv_spec],
            out_specs=qo_spec,
            scratch_shapes=[
                pltpu.VMEM((H, tq, 1), jnp.float32),   # running max m
                pltpu.VMEM((H, tq, 1), jnp.float32),   # running denom l
                pltpu.VMEM((H, tq, hd), jnp.float32),  # output accumulator
            ],
        ),
        compiler_params=pltpu.CompilerParams(
            dimension_semantics=("parallel", "parallel", "arbitrary")),
    )(q, k, v)


# ----------------------------- module wrapper -----------------------------

def causal_self_attention(x, params, n_head, *, compute_dtype=None, tq=256, tkv=256):
    """Forward pass of CausalSelfAttention (default config branch), eval mode.

    compute_dtype: optionally cast matmul inputs (e.g. jnp.bfloat16) while keeping
    f32 accumulation and softmax statistics; None keeps the input dtype.
    """
    B, T, C = x.shape
    hd = C // n_head
    cd = compute_dtype if compute_dtype is not None else x.dtype

    # c_attn: (B*T, C) -> (B*T, 3C)
    qkv = pallas_linear(x.reshape(B * T, C).astype(cd),
                        params["c_attn_w"].astype(cd), params["c_attn_b"],
                        out_dtype=cd)
    qkv = qkv.reshape(B, T, 3, n_head, hd)

    # (B, T, 3, H, hd) -> 3 x (B, H, T, hd)
    def to_heads(i):
        return qkv[:, :, i].transpose(0, 2, 1, 3)

    qh, kh, vh = to_heads(0), to_heads(1), to_heads(2)

    yh = pallas_flash_causal_attention(qh, kh, vh, tq=tq, tkv=tkv)  # (B, H, T, hd)

    # back to (B*T, C) for c_proj (resid_dropout is identity in eval mode)
    y = yh.transpose(0, 2, 1, 3).reshape(B * T, C)

    out = pallas_linear(y.astype(cd), params["c_proj_w"].astype(cd),
                        params["c_proj_b"], out_dtype=x.dtype)
    return out.reshape(B, T, C)


def reference(x, params, n_head):
    """Plain-JAX reference for verification."""
    B, T, C = x.shape
    hd = C // n_head
    qkv = x.reshape(B * T, C) @ params["c_attn_w"] + params["c_attn_b"]
    qkv = qkv.reshape(B, T, 3 * C)
    q, k, v = jnp.split(qkv, 3, axis=2)
    q = q.reshape(B, T, n_head, hd).transpose(0, 2, 1, 3)
    k = k.reshape(B, T, n_head, hd).transpose(0, 2, 1, 3)
    v = v.reshape(B, T, n_head, hd).transpose(0, 2, 1, 3)
    s = (q @ jnp.swapaxes(k, -1, -2)) / math.sqrt(hd)
    mask = jnp.tril(jnp.ones((T, T), dtype=bool))
    s = jnp.where(mask[None, None], s, -jnp.inf)
    att = jax.nn.softmax(s, axis=-1)
    y = att @ v
    y = y.transpose(0, 2, 1, 3).reshape(B, T, C)
    out = y.reshape(B * T, C) @ params["c_proj_w"] + params["c_proj_b"]
    return out.reshape(B, T, C)


if __name__ == "__main__":
    # Config (small, consistent with the module): n_embd=32, n_head=4, block_size=8,
    # bias=True, dropout=0.0, question_number=2 (default path), sliding_window=False.
    B, T, C, n_head = 2, 8, 32, 4

    key = jax.random.PRNGKey(0)
    k_x, k_w1, k_b1, k_w2, k_b2 = jax.random.split(key, 5)

    x = jax.random.normal(k_x, (B, T, C), dtype=jnp.float32)

    # Torch Linear stores W as (out, in); here we directly build the transposed
    # (in, out) matrices used as x @ W.
    params = {
        "c_attn_w": jax.random.normal(k_w1, (C, 3 * C), dtype=jnp.float32) * 0.02,
        "c_attn_b": jax.random.normal(k_b1, (3 * C,), dtype=jnp.float32) * 0.02,
        "c_proj_w": jax.random.normal(k_w2, (C, C), dtype=jnp.float32) * 0.02,
        "c_proj_b": jax.random.normal(k_b2, (C,), dtype=jnp.float32) * 0.02,
    }

    out = causal_self_attention(x, params, n_head)
    out = jax.block_until_ready(out)

    ref = reference(x, params, n_head)
    assert out.shape == (B, T, C)
    assert jnp.allclose(out, ref, atol=1e-5, rtol=1e-5), "mismatch vs reference"

    print("KERNEL_OK")
</pallas_src>

<mosaic_0001>
module attributes {stable_mosaic.version = 11 : i64} {
  func.func @_linear_kernel(%arg0: i32, %arg1: i32, %arg2: i32, %arg3: memref<16x32xf32, #tpu.memory_space<vmem>>, %arg4: memref<32x96xf32, #tpu.memory_space<vmem>>, %arg5: memref<1x96xf32, #tpu.memory_space<vmem>>, %arg6: memref<16x96xf32, #tpu.memory_space<vmem>>, %arg7: memref<16x96xf32, #tpu.memory_space<vmem>>) attributes {dimension_semantics = [#tpu.dimension_semantics<parallel>, #tpu.dimension_semantics<parallel>, #tpu.dimension_semantics<arbitrary>], iteration_bounds = array<i64: 1, 1, 1>, scalar_prefetch = 0 : i64, scratch_operands = 1 : i64, tpu.core_type = #tpu.core_type<tc>, window_params = [{transform_indices = @transform_0, window_bounds = array<i64: 16, 32>}, {transform_indices = @transform_1, window_bounds = array<i64: 32, 96>}, {transform_indices = @transform_2, window_bounds = array<i64: 1, 96>}, {transform_indices = @transform_3, window_bounds = array<i64: 16, 96>}]} {
    %c0_i32 = arith.constant 0 : i32
    %0 = arith.cmpi eq, %arg2, %c0_i32 : i32
    %1 = arith.extui %0 : i1 to i32
    %c0_i32_0 = arith.constant 0 : i32
    %2 = arith.cmpi ne, %1, %c0_i32_0 : i32
    scf.if %2 {
      %cst_10 = arith.constant 0.000000e+00 : f32
      %12 = vector.broadcast %cst_10 : f32 to vector<16x96xf32>
      %c0_11 = arith.constant 0 : index
      %c0_12 = arith.constant 0 : index
      %13 = vector.load %arg7[%c0_11, %c0_12] : memref<16x96xf32, #tpu.memory_space<vmem>>, vector<16x96xf32>
      tpu.vector_store %arg7[%c0_11, %c0_12], %12 {strides = array<i32>} : memref<16x96xf32, #tpu.memory_space<vmem>>, vector<16x96xf32>,
    } else {
    }
    %c0 = arith.constant 0 : index
    %c0_1 = arith.constant 0 : index
    %3 = vector.load %arg7[%c0, %c0_1] : memref<16x96xf32, #tpu.memory_space<vmem>>, vector<16x96xf32>
    %c0_2 = arith.constant 0 : index
    %c0_3 = arith.constant 0 : index
    %4 = vector.load %arg3[%c0_2, %c0_3] : memref<16x32xf32, #tpu.memory_space<vmem>>, vector<16x32xf32>
    %c0_4 = arith.constant 0 : index
    %c0_5 = arith.constant 0 : index
    %5 = vector.load %arg4[%c0_4, %c0_5] : memref<32x96xf32, #tpu.memory_space<vmem>>, vector<32x96xf32>
    %cst = arith.constant dense<0.000000e+00> : vector<16x96xf32>
    %6 = tpu.matmul %4, %5, %cst {dimension_numbers = #tpu.dot_dimension_numbers<[1], [0], [0], [1], [0, 0, 1, 1], [], []>} : vector<16x32xf32>, vector<32x96xf32>, vector<16x96xf32> -> vector<16x96xf32>
    %7 = arith.addf %3, %6 : vector<16x96xf32>
    %c0_6 = arith.constant 0 : index
    %c0_7 = arith.constant 0 : index
    %8 = vector.load %arg7[%c0_6, %c0_7] : memref<16x96xf32, #tpu.memory_space<vmem>>, vector<16x96xf32>
    tpu.vector_store %arg7[%c0_6, %c0_7], %7 {strides = array<i32>} : memref<16x96xf32, #tpu.memory_space<vmem>>, vector<16x96xf32>,
    %c0_i32_8 = arith.constant 0 : i32
    %9 = arith.cmpi eq, %arg2, %c0_i32_8 : i32
    %10 = arith.extui %9 : i1 to i32
    %c0_i32_9 = arith.constant 0 : i32
    %11 = arith.cmpi ne, %10, %c0_i32_9 : i32
    scf.if %11 {
      %c0_10 = arith.constant 0 : index
      %c0_11 = arith.constant 0 : index
      %12 = vector.load %arg7[%c0_10, %c0_11] : memref<16x96xf32, #tpu.memory_space<vmem>>, vector<16x96xf32>
      %c0_12 = arith.constant 0 : index
      %c0_13 = arith.constant 0 : index
      %13 = vector.load %arg5[%c0_12, %c0_13] : memref<1x96xf32, #tpu.memory_space<vmem>>, vector<1x96xf32>
      %14 = vector.broadcast %13 : vector<1x96xf32> to vector<16x96xf32>
      %15 = arith.addf %12, %14 : vector<16x96xf32>
      %c0_14 = arith.constant 0 : index
      %c0_15 = arith.constant 0 : index
      %16 = vector.load %arg6[%c0_14, %c0_15] : memref<16x96xf32, #tpu.memory_space<vmem>>, vector<16x96xf32>
      tpu.vector_store %arg6[%c0_14, %c0_15], %15 {strides = array<i32>} : memref<16x96xf32, #tpu.memory_space<vmem>>, vector<16x96xf32>,
    } else {
    }
    return
  }
  func.func @transform_0(%arg0: i32, %arg1: i32, %arg2: i32) -> (i32, i32) {
    %c0_i32 = arith.constant 0 : i32
    return %arg0, %arg2 : i32, i32
  }
  func.func @transform_1(%arg0: i32, %arg1: i32, %arg2: i32) -> (i32, i32) {
    %c0_i32 = arith.constant 0 : i32
    return %arg2, %arg1 : i32, i32
  }
  func.func @transform_2(%arg0: i32, %arg1: i32, %arg2: i32) -> (i32, i32) {
    %c0_i32 = arith.constant 0 : i32
    %c0_i32_0 = arith.constant 0 : i32
    return %c0_i32, %arg1 : i32, i32
  }
  func.func @transform_3(%arg0: i32, %arg1: i32, %arg2: i32) -> (i32, i32) {
    %c0_i32 = arith.constant 0 : i32
    return %arg0, %arg1 : i32, i32
  }
}

</mosaic_0001>

<bundles_post_ra>
// kernel: tpu_custom_call.1
= control target key start
LH: loop header
LB: loop body
LE: loop exit
PB: predicated region body
PF: predicated region fallthrough
CT: control target
= control target key end

     0   :  { %8 = vsyncpa [#allocation4], 0  ;;  %s365_s0 = inlined_call_operand.hbm [shape: f32[16,32], index: 0, kind: input, shape index: {}]   ;;  %s366_s1 = inlined_call_operand.hbm [shape: f32[32,96], index: 1, kind: input, shape index: {}]   ;;  %s367_s2 = inlined_call_operand.vmem [shape: f32[1,96], index: 2, kind: input, shape index: {}]   ;;  %s368_s3 = inlined_call_operand.hbm [shape: f32[16,96], index: 3, kind: output, shape index: {}]  }
   0x1   :  { %9 = vsyncpa [#allocation7], 0 }
   0x2   :  { %10 = vsyncpa [#allocation5], 0  ;;  %s285_s12 = smov [#allocation3]   ;;  %s213_s16 = scalar_lea.hbm %s365_s0, 256 }
   0x3   :  { %s16_s13 = sshll.u32 %s285_s12, 4  ;;  %p214_p0 = scmp.ne.s32.totalorder %s365_s0, %s213_s16  ;;  %s17_s13 = int_to_ptr.vmem [resolvable:$true] %s16_s13 }
   0x4   :  { %p217_p1 = scmp.lt.u32.totalorder %s213_s16, %s365_s0 }
   0x6   :  { %p219_p2 = pnand %p217_p1, %p214_p0 }
   0x8   :  { %222 = shalt.err (!%p219_p2)
}
   0x9   :  { %s223_s21 = scalar_lea.vmem %s17_s13, 256  ;;  %p228_p4 = scmp.lt.s32.totalorder %s17_s13, %s17_s13 }
   0xa   :  { %p224_p3 = scmp.ne.s32.totalorder %s17_s13, %s223_s21  ;;  %p229_p5 = scmp.lt.s32.totalorder %s223_s21, %s223_s21 }
   0xc   :  { %p230_p6 = por %p229_p5, %p228_p4 }
   0xe   :  { %p231_p7 = pnand %p230_p6, %p224_p3 }
  0x10   :  { %234 = shalt.err (!%p231_p7)
}
  0x11   :  { %s286_s22 = smov 128   ;;  %s287_s23 = smov 8  }
  0x12   :  { %22 = dma.hbm_to_vmem [thread:$0]  %s365_s0, 256, %s17_s13, [#allocation4], %s286_s22, %s286_s22, %s287_s23  }
  0x13   :  { %s288_s26 = smov [#allocation6]   ;;  %s235_s30 = scalar_lea.hbm %s366_s1, 512 }
  0x14   :  { %s28_s27 = sshll.u32 %s288_s26, 4  ;;  %p236_p8 = scmp.ne.s32.totalorder %s366_s1, %s235_s30  ;;  %s29_s27 = int_to_ptr.vmem [resolvable:$true] %s28_s27 }
  0x15   :  { %p239_p9 = scmp.lt.u32.totalorder %s235_s30, %s366_s1 }
  0x17   :  { %p241_p10 = pnand %p239_p9, %p236_p8 }
  0x19   :  { %244 = shalt.err (!%p241_p10)
}
  0x1a   :  { %s245_s8 = scalar_lea.vmem %s29_s27, 512  ;;  %p250_p12 = scmp.lt.s32.totalorder %s29_s27, %s29_s27 }
  0x1b   :  { %p246_p11 = scmp.ne.s32.totalorder %s29_s27, %s245_s8  ;;  %p251_p13 = scmp.lt.s32.totalorder %s245_s8, %s245_s8 }
  0x1d   :  { %p252_p0 = por %p251_p13, %p250_p12 }
  0x1f   :  { %p253_p1 = pnand %p252_p0, %p246_p11 }
  0x21   :  { %256 = shalt.err (!%p253_p1)
}
  0x22   :  { %34 = dma.hbm_to_vmem [thread:$0]  %s366_s1, 512, %s29_s27, [#allocation7], %s286_s22, %s286_s22, %s287_s23  }
  0x23   :  { %279 = dma.done.wait [#allocation4], 256  }
  0x24   :  { %280 = vsyncadd [#allocation4], 4294967040 }
  0x25   :  { %281 = dma.done.wait [#allocation7], 512  }
  0x26   :  { %282 = vsyncadd [#allocation7], 4294966784  ;;  %vm47_vm0 = vcmask 785408   ;;  %v289_v0 = vmov 0.0   ;;  %vm58_vm1 = vcmask 261120   ;;  %v54_v1 = vld [vmem:[#allocation6] sm:$0xff] }
  0x27   :  { %49 = vst.msk [vmem:[#allocation2 + $0x8] sm:$0xff] %vm47_vm0, %v289_v0  ;;  %48 = vst.msk [vmem:[#allocation2] sm:$0xff] %vm47_vm0, %v289_v0  ;;  %v55_v2 = vld [vmem:[#allocation6 + $0x8] sm:$0xff]  ;;  %v56_v3 = vld [vmem:[#allocation6 + $0x10] sm:$0xff]  ;;  %s290_s11 = smov [#allocation8]  }
  0x28   :  { %v199_v4 = vpack.c.bf16 %v55_v2, %v54_v1  ;;  %v57_v5 = vld [vmem:[#allocation6 + $0x18] sm:$0xff]  ;;  %v52_v6 = vld [vmem:[#allocation3] sm:$0xff]  ;;  %v181_v15 = vld [vmem:[%s367_s2] ss:$0 sm:$0xff]  ;;  %s166_s12 = sshll.u32 %s290_s11, 4  ;;  %s167_s12 = int_to_ptr.vmem [resolvable:$true] %s166_s12 }
  0x29   :  { %v203_v7 = vpack.c.bf16 %v57_v5, %v56_v3  ;;  %196 = vmatprep.mubr.msk.f32.mxu0 %vm58_vm1, %v52_v6  ;;  %v53_v8 = vld [vmem:[#allocation3 + $0x8] sm:$0xff]  ;;  %s257_s13 = scalar_lea.vmem %s167_s12, 256  ;;  %p262_p3 = scmp.lt.s32.totalorder %s167_s12, %s167_s12 }
  0x2a   :  { %200 = vmatprep.subr.bf16.mxu0 %v199_v4  ;;  %p258_p2 = scmp.ne.s32.totalorder %s167_s12, %s257_s13  ;;  %p263_p4 = scmp.lt.s32.totalorder %s257_s13, %s257_s13 }
  0x2b   :  { %202 = vmatpush3.bf16.msra.mxu0 %v199_v4 }
  0x2c   :  { %204 = vmatprep.subr.bf16.mxu0 %v203_v7  ;;  %p264_p5 = por %p263_p4, %p262_p3 }
  0x2e   :  { %v51_v9 = vld [vmem:[#allocation2 + $0x8] sm:$0xff]  ;;  %v50_v10 = vld [vmem:[#allocation2] sm:$0xff]  ;;  %p265_p6 = pnand %p264_p5, %p258_p2 }
  0x2f   :  { %206 = vmatpush3.bf16.msra.mxu0 %v203_v7 }
  0x32   :  { %197 = vmatmul.mubr.msk.f32.vlgmr.msra.gmra.mrb[0].mxu0 %vm58_vm1, %v53_v8 }
 0x105   :  { %v198_v11 = vpop.f32.mrb[0].mxu0 }
 0x106   :  { %v141_v12 = vadd.f32 %v198_v11, %v51_v9  ;;  %v131_v13 = vpop.f32.mrb[1].mxu0 }
 0x107   :  { %v140_v14 = vadd.f32 %v131_v13, %v50_v10 }
 0x108   :  { %144 = vst.msk [vmem:[#allocation2 + $0x8] sm:$0xff] %vm47_vm0, %v141_v12 }
 0x109   :  { %143 = vst.msk [vmem:[#allocation2] sm:$0xff] %vm47_vm0, %v140_v14 }
 0x10f   :  { %v149_v16 = vld [vmem:[#allocation2 + $0x8] sm:$0xff] }
 0x110   :  { %v148_v17 = vld [vmem:[#allocation2] sm:$0xff]  ;;  %v158_v18 = vadd.f32 %v181_v15, %v149_v16 }
 0x111   :  { %v157_v19 = vadd.f32 %v181_v15, %v148_v17 }
 0x112   :  { %160 = vst.msk [vmem:[#allocation8 + $0x8] sm:$0xff] %vm47_vm0, %v158_v18 }
 0x113   :  { %159 = vst.msk [vmem:[#allocation8] sm:$0xff] %vm47_vm0, %v157_v19 }
 0x114   :  { %268 = shalt.err (!%p265_p6)
}
 0x115   :  { %s269_s15 = scalar_lea.hbm %s368_s3, 256 }
 0x116   :  { %p270_p7 = scmp.ne.s32.totalorder %s368_s3, %s269_s15  ;;  %p273_p8 = scmp.lt.u32.totalorder %s269_s15, %s368_s3 }
 0x118   :  { %p275_p9 = pnand %p273_p8, %p270_p7 }
 0x11a   :  { %278 = shalt.err (!%p275_p9)
}
 0x11b   :  { %172 = dma.vmem_to_hbm [thread:$0]  %s167_s12, 256, %s368_s3, [#allocation5], %s286_s22, %s286_s22, %s287_s23  }
 0x11c   :  { %283 = dma.done.wait [#allocation5], 256  }
 0x11d   :  { %284 = vsyncadd [#allocation5], 4294967040 }
 0x11e   :  { %176 = vsyncpa [#allocation4], 1 }
 0x11f   :  { %177 = vsyncpa [#allocation7], 1 }
 0x120   :  { %178 = vsyncpa [#allocation5], 1 }

</bundles_post_ra>
